<compile_context>
chip_gen: v7x
topology: tpu7x:2x2x1
jax: 0.10.0
libtpu: 0.0.40
codegen_flags: <defaults>
</compile_context>

<pallas_src>
import jax
import jax.numpy as jnp
from jax.experimental import pallas as pl
from jax.experimental.pallas import tpu as pltpu


def _mha_fusion_kernel(x1_ref, x2_ref, w1_ref, b1_ref, w2_ref, b2_ref, out_ref):
    # Fuse the input concat in VMEM (avoids a separate XLA concat / HBM pass).
    combined = jnp.concatenate([x1_ref[...], x2_ref[...]], axis=-1)   # [TB, D] f32

    # All heads in one lane-dense MXU matmul: [TB, D] x [D, H*hidden].
    hid = jnp.tanh(
        jnp.dot(combined.astype(jnp.bfloat16), w1_ref[...],
                preferred_element_type=jnp.float32)
        + b1_ref[...])                                                # [TB, H*hidden] f32

    # Per-head scores via one block-diagonal matmul: [TB, H*hidden] x [H*hidden, H].
    scores = (jnp.dot(hid.astype(jnp.bfloat16), w2_ref[...],
                      preferred_element_type=jnp.float32)
              + b2_ref[...])                                          # [TB, H] f32

    # Softmax over heads (dim=1 in the PyTorch module), f32, exact divide.
    m = jnp.max(scores, axis=-1, keepdims=True)
    e = jnp.exp(scores - m)
    attn = e / jnp.sum(e, axis=-1, keepdims=True)                     # [TB, H]

    # Weighted sum over heads, factorized: attn is constant along the feature
    # dim, so  sum_h attn[:,h] * combined == combined * sum_h attn[:,h].
    row_w = jnp.sum(attn, axis=-1, keepdims=True)                     # [TB, 1]
    out_ref[...] = (combined * row_w).astype(out_ref.dtype)


def _fuse_params(w1, b1, w2, b2):
    """Reshape per-head params into fused, MXU-friendly operands (done once).

    w1: [H, D, hidden] -> w1f:  [D, H*hidden]   (bf16)
    b1: [H, 1, hidden] -> b1f:  [1, H*hidden]   (f32)
    w2: [H, hidden, 1] -> w2bd: [H*hidden, H]   block-diagonal (bf16)
    b2: [H, 1, 1]      -> b2f:  [1, H]          (f32)
    """
    H, D, hidden = w1.shape
    w1f = jnp.transpose(w1, (1, 0, 2)).reshape(D, H * hidden)
    b1f = b1.reshape(1, H * hidden)
    eye = jnp.eye(H, dtype=w2.dtype)                                  # [H, H]
    w2bd = (w2[:, :, 0][:, :, None] * eye[:, None, :]).reshape(H * hidden, H)
    b2f = b2.reshape(1, H)
    return (w1f.astype(jnp.bfloat16), b1f.astype(jnp.float32),
            w2bd.astype(jnp.bfloat16), b2f.astype(jnp.float32))


def mha_fusion(x1, x2, w1, b1, w2, b2, *, tile_b=512):
    """Pallas wrapper. x1:[B,D1], x2:[B,D2] -> [B, D1+D2]."""
    x1 = x1.astype(jnp.float32)
    x2 = x2.astype(jnp.float32)
    B, D1 = x1.shape
    _, D2 = x2.shape
    D = D1 + D2
    H, _, hidden = w1.shape
    HH = H * hidden

    w1f, b1f, w2bd, b2f = _fuse_params(w1, b1, w2, b2)

    # Large batch tiles: this kernel is HBM-bound, so bigger tiles = fewer grid
    # steps, larger DMAs, better MXU row occupancy.
    tile_b = min(tile_b, B)
    # Keep >= 2 grid steps when B allows so the "parallel" batch axis can shard
    # across both TensorCores on v7x (no-op on v5e/v6e).
    if pl.cdiv(B, tile_b) < 2 and B >= 16 and B % 16 == 0:
        tile_b = B // 2
    grid = (pl.cdiv(B, tile_b),)

    resident = lambda i: (0, 0)   # weights: same block every step -> stay in VMEM
    return pl.pallas_call(
        _mha_fusion_kernel,
        out_shape=jax.ShapeDtypeStruct((B, D), jnp.float32),
        grid=grid,
        in_specs=[
            pl.BlockSpec((tile_b, D1), lambda i: (i, 0)),   # x1 tile
            pl.BlockSpec((tile_b, D2), lambda i: (i, 0)),   # x2 tile
            pl.BlockSpec((D, HH), resident),                # w1 fused
            pl.BlockSpec((1, HH), resident),                # b1 fused
            pl.BlockSpec((HH, H), resident),                # w2 block-diag
            pl.BlockSpec((1, H), resident),                 # b2 flat
        ],
        out_specs=pl.BlockSpec((tile_b, D), lambda i: (i, 0)),
        compiler_params=pltpu.CompilerParams(
            dimension_semantics=("parallel",),
        ),
    )(x1, x2, w1f, b1f, w2bd, b2f)


def mha_fusion_ref(x1, x2, w1, b1, w2, b2):
    """Pure-JAX reference mirroring the PyTorch forward (f32)."""
    combined = jnp.concatenate([x1, x2], axis=1)                       # [B, D]
    hid = jnp.tanh(jnp.einsum("bd,hdk->bhk", combined, w1)
                   + jnp.transpose(b1, (1, 0, 2)))                     # [B, H, hidden]
    scores = jnp.einsum("bhk,hko->bho", hid, w2) + b2[None, :, 0, :]   # [B, H, 1]
    attn = jax.nn.softmax(scores, axis=1)                              # [B, H, 1]
    return jnp.sum(attn * combined[:, None, :], axis=1)                # [B, D]


if __name__ == "__main__":
    # Small deterministic shapes. D = 128 keeps output stores lane-dense and
    # H*HIDDEN = 128 makes the fused hidden matmul exactly one lane-full.
    # B = 256 with tile_b = min(512, B) -> the wrapper picks tile_b = 128 so the
    # grid has 2 steps (megacore-friendly on v7x).
    B, D1, D2 = 256, 64, 64
    D = D1 + D2
    H, HIDDEN = 4, 32

    key = jax.random.PRNGKey(0)
    k_x1, k_x2, k_w1, k_b1, k_w2, k_b2 = jax.random.split(key, 6)

    x1 = jax.random.normal(k_x1, (B, D1), dtype=jnp.float32)
    x2 = jax.random.normal(k_x2, (B, D2), dtype=jnp.float32)

    # Deterministic synthetic parameters (stacked per head, x@W convention).
    w1 = 0.1 * jax.random.normal(k_w1, (H, D, HIDDEN), dtype=jnp.float32)
    b1 = 0.1 * jax.random.normal(k_b1, (H, 1, HIDDEN), dtype=jnp.float32)
    w2 = 0.1 * jax.random.normal(k_w2, (H, HIDDEN, 1), dtype=jnp.float32)
    b2 = 0.1 * jax.random.normal(k_b2, (H, 1, 1), dtype=jnp.float32)

    out = mha_fusion(x1, x2, w1, b1, w2, b2)
    out = jax.block_until_ready(out)

    ref = mha_fusion_ref(x1, x2, w1, b1, w2, b2)
    assert out.shape == (B, D)
    # Tolerance covers bf16 matmul operands inside the softmax path (the final
    # weighted sum itself stays in f32).
    assert jnp.allclose(out, ref, atol=1e-2, rtol=1e-2), "mismatch vs reference"

    print("KERNEL_OK")
</pallas_src>

<mosaic_0001>
module attributes {stable_mosaic.version = 11 : i64} {
  func.func @_mha_fusion_kernel(%arg0: i32, %arg1: memref<128x64xf32, #tpu.memory_space<vmem>>, %arg2: memref<128x64xf32, #tpu.memory_space<vmem>>, %arg3: memref<128x128xbf16, #tpu.memory_space<vmem>>, %arg4: memref<1x128xf32, #tpu.memory_space<vmem>>, %arg5: memref<128x4xbf16, #tpu.memory_space<vmem>>, %arg6: memref<1x4xf32, #tpu.memory_space<vmem>>, %arg7: memref<128x128xf32, #tpu.memory_space<vmem>>) attributes {dimension_semantics = [#tpu.dimension_semantics<parallel>], iteration_bounds = array<i64: 2>, scalar_prefetch = 0 : i64, scratch_operands = 0 : i64, tpu.core_type = #tpu.core_type<tc>, window_params = [{transform_indices = @transform_0, window_bounds = array<i64: 128, 64>}, {transform_indices = @transform_1, window_bounds = array<i64: 128, 64>}, {pipeline_mode = #tpu.pipeline_mode<synchronous>, transform_indices = @transform_2, window_bounds = array<i64: 128, 128>}, {pipeline_mode = #tpu.pipeline_mode<synchronous>, transform_indices = @transform_3, window_bounds = array<i64: 1, 128>}, {pipeline_mode = #tpu.pipeline_mode<synchronous>, transform_indices = @transform_4, window_bounds = array<i64: 128, 4>}, {pipeline_mode = #tpu.pipeline_mode<synchronous>, transform_indices = @transform_5, window_bounds = array<i64: 1, 4>}, {transform_indices = @transform_6, window_bounds = array<i64: 128, 128>}]} {
    %c0 = arith.constant 0 : index
    %c0_0 = arith.constant 0 : index
    %0 = vector.load %arg1[%c0, %c0_0] : memref<128x64xf32, #tpu.memory_space<vmem>>, vector<128x64xf32>
    %c0_1 = arith.constant 0 : index
    %c0_2 = arith.constant 0 : index
    %1 = vector.load %arg2[%c0_1, %c0_2] : memref<128x64xf32, #tpu.memory_space<vmem>>, vector<128x64xf32>
    %2 = tpu.concatenate %0, %1 in 1 : vector<128x64xf32>, vector<128x64xf32> -> vector<128x128xf32>
    %3 = arith.truncf %2 : vector<128x128xf32> to vector<128x128xbf16>
    %c0_3 = arith.constant 0 : index
    %c0_4 = arith.constant 0 : index
    %4 = vector.load %arg3[%c0_3, %c0_4] : memref<128x128xbf16, #tpu.memory_space<vmem>>, vector<128x128xbf16>
    %cst = arith.constant dense<0.000000e+00> : vector<128x128xf32>
    %5 = tpu.matmul %3, %4, %cst {dimension_numbers = #tpu.dot_dimension_numbers<[1], [0], [0], [1], [0, 0, 1, 1], [], []>} : vector<128x128xbf16>, vector<128x128xbf16>, vector<128x128xf32> -> vector<128x128xf32>
    %c0_5 = arith.constant 0 : index
    %c0_6 = arith.constant 0 : index
    %6 = vector.load %arg4[%c0_5, %c0_6] : memref<1x128xf32, #tpu.memory_space<vmem>>, vector<1x128xf32>
    %7 = vector.broadcast %6 : vector<1x128xf32> to vector<128x128xf32>
    %8 = arith.addf %5, %7 : vector<128x128xf32>
    %9 = math.tanh %8 : vector<128x128xf32>
    %10 = arith.truncf %9 : vector<128x128xf32> to vector<128x128xbf16>
    %c0_7 = arith.constant 0 : index
    %c0_8 = arith.constant 0 : index
    %11 = vector.load %arg5[%c0_7, %c0_8] : memref<128x4xbf16, #tpu.memory_space<vmem>>, vector<128x4xbf16>
    %cst_9 = arith.constant dense<0.000000e+00> : vector<128x4xf32>
    %12 = tpu.matmul %10, %11, %cst_9 {dimension_numbers = #tpu.dot_dimension_numbers<[1], [0], [0], [1], [0, 0, 1, 1], [], []>} : vector<128x128xbf16>, vector<128x4xbf16>, vector<128x4xf32> -> vector<128x4xf32>
    %c0_10 = arith.constant 0 : index
    %c0_11 = arith.constant 0 : index
    %13 = vector.load %arg6[%c0_10, %c0_11] : memref<1x4xf32, #tpu.memory_space<vmem>>, vector<1x4xf32>
    %14 = vector.broadcast %13 : vector<1x4xf32> to vector<128x4xf32>
    %15 = arith.addf %12, %14 : vector<128x4xf32>
    %cst_12 = arith.constant dense<0xFF800000> : vector<128xf32>
    %16 = vector.multi_reduction <maximumf>, %15, %cst_12 [1] : vector<128x4xf32> to vector<128xf32>
    %17 = vector.shape_cast %16 : vector<128xf32> to vector<128x1xf32>
    %18 = vector.broadcast %17 : vector<128x1xf32> to vector<128x4xf32>
    %19 = arith.subf %15, %18 : vector<128x4xf32>
    %20 = math.exp %19 : vector<128x4xf32>
    %cst_13 = arith.constant dense<0.000000e+00> : vector<128xf32>
    %21 = vector.multi_reduction <add>, %20, %cst_13 [1] : vector<128x4xf32> to vector<128xf32>
    %22 = vector.shape_cast %21 : vector<128xf32> to vector<128x1xf32>
    %23 = vector.broadcast %22 : vector<128x1xf32> to vector<128x4xf32>
    %24 = arith.divf %20, %23 : vector<128x4xf32>
    %cst_14 = arith.constant dense<0.000000e+00> : vector<128xf32>
    %25 = vector.multi_reduction <add>, %24, %cst_14 [1] : vector<128x4xf32> to vector<128xf32>
    %26 = vector.shape_cast %25 : vector<128xf32> to vector<128x1xf32>
    %27 = vector.broadcast %26 : vector<128x1xf32> to vector<128x128xf32>
    %28 = arith.mulf %2, %27 : vector<128x128xf32>
    %c0_15 = arith.constant 0 : index
    %c0_16 = arith.constant 0 : index
    %29 = vector.load %arg7[%c0_15, %c0_16] : memref<128x128xf32, #tpu.memory_space<vmem>>, vector<128x128xf32>
    tpu.vector_store %arg7[%c0_15, %c0_16], %28 {strides = array<i32>} : memref<128x128xf32, #tpu.memory_space<vmem>>, vector<128x128xf32>,
    return
  }
  func.func @transform_0(%arg0: i32) -> (i32, i32) {
    %c0_i32 = arith.constant 0 : i32
    %c0_i32_0 = arith.constant 0 : i32
    return %arg0, %c0_i32 : i32, i32
  }
  func.func @transform_1(%arg0: i32) -> (i32, i32) {
    %c0_i32 = arith.constant 0 : i32
    %c0_i32_0 = arith.constant 0 : i32
    return %arg0, %c0_i32 : i32, i32
  }
  func.func @transform_2(%arg0: i32) -> (i32, i32) {
    %c0_i32 = arith.constant 0 : i32
    %c0_i32_0 = arith.constant 0 : i32
    %c0_i32_1 = arith.constant 0 : i32
    return %c0_i32, %c0_i32_0 : i32, i32
  }
  func.func @transform_3(%arg0: i32) -> (i32, i32) {
    %c0_i32 = arith.constant 0 : i32
    %c0_i32_0 = arith.constant 0 : i32
    %c0_i32_1 = arith.constant 0 : i32
    return %c0_i32, %c0_i32_0 : i32, i32
  }
  func.func @transform_4(%arg0: i32) -> (i32, i32) {
    %c0_i32 = arith.constant 0 : i32
    %c0_i32_0 = arith.constant 0 : i32
    %c0_i32_1 = arith.constant 0 : i32
    return %c0_i32, %c0_i32_0 : i32, i32
  }
  func.func @transform_5(%arg0: i32) -> (i32, i32) {
    %c0_i32 = arith.constant 0 : i32
    %c0_i32_0 = arith.constant 0 : i32
    %c0_i32_1 = arith.constant 0 : i32
    return %c0_i32, %c0_i32_0 : i32, i32
  }
  func.func @transform_6(%arg0: i32) -> (i32, i32) {
    %c0_i32 = arith.constant 0 : i32
    %c0_i32_0 = arith.constant 0 : i32
    return %arg0, %c0_i32 : i32, i32
  }
}

</mosaic_0001>

<bundles_post_ra>
// kernel: tpu_custom_call.1
= control target key start
LH: loop header
LB: loop body
LE: loop exit
PB: predicated region body
PF: predicated region fallthrough
CT: control target
= control target key end

     0   :  { %11 = vsyncpa [#allocation3], 0  ;;  %s1985_s0 = inlined_call_operand.vmem [shape: f32[256,64], index: 0, kind: input, shape index: {}]   ;;  %s1986_s1 = inlined_call_operand.vmem [shape: f32[256,64], index: 1, kind: input, shape index: {}]   ;;  %s1987_s2 = inlined_call_operand.vmem [shape: bf16[128,128], index: 2, kind: input, shape index: {}]   ;;  %s1988_s3 = inlined_call_operand.vmem [shape: f32[1,128], index: 3, kind: input, shape index: {}]   ;;  %s1989_s4 = inlined_call_operand.vmem [shape: bf16[128,4], index: 4, kind: input, shape index: {}]   ;;  %s1990_s5 = inlined_call_operand.vmem [shape: f32[1,4], index: 5, kind: input, shape index: {}]   ;;  %s1991_s6 = inlined_call_operand.hbm [shape: f32[256,128], index: 6, kind: output, shape index: {}]  }
   0x1   :  { %13 = vsyncpa [#allocation3 + $0x1], 0  ;;  %s1488_s21 = smov 0   ;;  %s1490_s22 = smov 0  }
   0x2   :  { %s1492_s23 = smov 0   ;;  %s1494_s24 = smov 0  }
   0x3 LB: > { %s1509_s25 = sadd.s32 4294967295, %s1447_s24   ;;  %s1102_s26 = sadd.s32 4294967294, %s1447_s24   ;;  %s1447_s24 = sphi %s1494_s24, %s1997_s24   ;;  %s1443_s23 = sphi %s1492_s23, %s1996_s23   ;;  %s1439_s22 = sphi %s1490_s22, %s1995_s22   ;;  %s1435_s21 = sphi %s1488_s21, %s1994_s21  }
   0x4   : > { %s1513_s27 = sadd.s32 1, %s1447_s24   ;;  %s162_s28 = sadd.s32 1, %s1443_s23 }
   0x5   : > { %s159_s29 = ssub.s32 %s1447_s24, %s1513_s27  ;;  %p172_p0 = scmp.ne.s32.totalorder %s1443_s23, %s1439_s22 }
   0x6   : > { %p160_p1 = scmp.eq.s32.totalorder %s159_s29, 0  ;;  %p173_p2 = scmp.eq.s32.totalorder %s1509_s25, 1 }
   0x7   : > { %p178_p3 = scmp.ne.s32.totalorder %s1439_s22, %s1435_s21  ;;  %p179_p4 = scmp.eq.s32.totalorder %s1102_s26, 1 }
   0x8   : > { %s1524_s30 = scalar_select %p160_p1, %s1443_s23, %s162_s28  }
   0x9   : > { %p1526_p5 = por %p173_p2, %p172_p0  ;;  %p1530_p6 = por %p179_p4, %p178_p3 }
   0xa   : > { %p1105_p7 = scmp.ge.s32.totalorder %s1447_s24, 1  ;;  %p227_p8 = scmp.lt.s32.totalorder %s1447_s24, 3 }
   0xc   : > { %p228_p9 = pnand %p1105_p7, %p227_p8 }
   0xd   : > { %s1107_s9 = sshll.u32 (!%p228_p9), %s1509_s25, 4  ;;  %v1273_v0 = vld [vmem:[%s1987_s2] sm:$0xff] (!%p228_p9)   ;;  %v1274_v1 = vld [vmem:[%s1987_s2 + $0x8] sm:$0xff] (!%p228_p9)   ;;  %v1275_v2 = vld [vmem:[%s1987_s2 + $0x10] sm:$0xff] (!%p228_p9)   ;;  %s1449_s20 = smov (!%p228_p9), 64   ;;  %vm372_vm0 = vcmask (!%p228_p9), 523264  }
   0xe   : > { %231 = sbr.rel (%p228_p9) target bundleno = 1104 (0x450), region = 44  ;;  %p263_p10 = scmp.lt.s32.totalorder (!%p228_p9), %s1107_s9, 31  ;;  %1167 = vmatprep.subr.bf16.mxu0 (!%p228_p9), %v1273_v0  ;;  %v1276_v7 = vld [vmem:[%s1987_s2 + $0x18] sm:$0xff] (!%p228_p9)   ;;  %v1277_v10 = vld [vmem:[%s1987_s2 + $0x20] sm:$0xff] (!%p228_p9)   ;;  %v1278_v13 = vld [vmem:[%s1987_s2 + $0x28] sm:$0xff] (!%p228_p9)   ;;  %vm757_vm1 = vcmask (!%p228_p9), 31744  }
   0xf   : > { %1168 = vmatpush3.bf16.msra.mxu0 (!%p228_p9), %v1273_v0  ;;  %v1279_v16 = vld [vmem:[%s1987_s2 + $0x30] sm:$0xff] (!%p228_p9)   ;;  %v1280_v19 = vld [vmem:[%s1987_s2 + $0x38] sm:$0xff] (!%p228_p9)   ;;  %v1281_v20 = vld [vmem:[%s1989_s4] sm:$0xff] (!%p228_p9)   ;;  %s1450_s28 = smov (!%p228_p9), [#allocation2]  }
  0x10   : > { %1169 = vmatprep.subr.bf16.mxu0 (!%p228_p9), %v1274_v1  ;;  %v1282_v21 = vld [vmem:[%s1989_s4 + $0x8] sm:$0xff] (!%p228_p9)   ;;  %1199 = vmatprep.subr.bf16.mxu1 (!%p228_p9), %v1281_v20  ;;  %v1283_v24 = vld [vmem:[%s1989_s4 + $0x10] sm:$0xff] (!%p228_p9)   ;;  %s1389_s29 = sshll.u32 (!%p228_p9), %s1450_s28, 4  ;;  %s1390_s29 = int_to_ptr.vmem [resolvable:$false] %s1389_s29 }
  0x11   : > { %1200 = vmatpush3.bf16.msra.mxu1 (!%p228_p9), %v1281_v20  ;;  %v1285_v20 = vld [vmem:[%s1989_s4 + $0x20] sm:$0xff] (!%p228_p9)   ;;  %s1391_s10 = scalar_lea.vmem (!%p228_p9), %s1390_s29, 4096 }
  0x12   : > { %1201 = vmatprep.subr.bf16.mxu1 (!%p228_p9), %v1282_v21 }
  0x13   : > { %1170 = vmatpush3.bf16.msra.mxu0 (!%p228_p9), %v1274_v1 }
  0x14   : > { %1171 = vmatprep.subr.bf16.mxu0 (!%p228_p9), %v1275_v2 }
  0x15   : > { %s1999_s9 = smov (!%p263_p10, %s1107_s9), 31  ;;  %1202 = vmatpush3.bf16.msra.mxu1 %v1282_v21  ;;  %v1286_v21 = vld [vmem:[%s1989_s4 + $0x28] sm:$0xff]  }
  0x16   : > { %s1108_s14 = sshll.u32 %s1999_s9, 3  ;;  %1203 = vmatprep.subr.bf16.mxu1 %v1283_v24 }
  0x17   : > { %s1551_s17 = scalar_lea.vmem %s1986_s1, %s1108_s14  ;;  %1172 = vmatpush3.bf16.msra.mxu0 %v1275_v2  ;;  %s1617_s15 = scalar_lea.vmem %s1985_s0, %s1108_s14 }
  0x18   : > { %v294_v3 = vld [vmem:[%s1551_s17 + $0x10] sm:$0xff]  ;;  %v292_v4 = vld [vmem:[%s1551_s17] sm:$0xff]  ;;  %v295_v5 = vld [vmem:[%s1551_s17 + $0x18] sm:$0xff]  ;;  %1173 = vmatprep.subr.bf16.mxu0 %v1276_v7 }
  0x19   : > { %328 = vrot.lane.b32.xlu1 %v294_v3, %s1449_s20  ;;  %324 = vrot.lane.b32.xlu0 %v292_v4, %s1449_s20  ;;  %v293_v6 = vld [vmem:[%s1551_s17 + $0x8] sm:$0xff]  ;;  %v296_v9 = vld [vmem:[%s1551_s17 + $0x20] sm:$0xff] }
  0x1a   : > { %v297_v8 = vld [vmem:[%s1551_s17 + $0x28] sm:$0xff]  ;;  %v299_v11 = vld [vmem:[%s1551_s17 + $0x38] sm:$0xff]  ;;  %v298_v12 = vld [vmem:[%s1551_s17 + $0x30] sm:$0xff]  ;;  %1204 = vmatpush3.bf16.msra.mxu1 %v1283_v24 }
  0x1b   : > { %1174 = vmatpush3.bf16.msra.mxu0 %v1276_v7  ;;  %v301_v14 = vld [vmem:[%s1551_s17 + $0x48] sm:$0xff]  ;;  %v300_v15 = vld [vmem:[%s1551_s17 + $0x40] sm:$0xff]  ;;  %v303_v17 = vld [vmem:[%s1551_s17 + $0x58] sm:$0xff] }
  0x1c   : > { %1175 = vmatprep.subr.bf16.mxu0 %v1277_v10  ;;  %v302_v18 = vld [vmem:[%s1551_s17 + $0x50] sm:$0xff]  ;;  %v305_v22 = vld [vmem:[%s1551_s17 + $0x68] sm:$0xff]  ;;  %v304_v23 = vld [vmem:[%s1551_s17 + $0x60] sm:$0xff] }
  0x1d   : > { %330 = vrot.lane.b32.xlu1 %v295_v5, %s1449_s20  ;;  %326 = vrot.lane.b32.xlu0 %v293_v6, %s1449_s20  ;;  %v307_v25 = vld [vmem:[%s1551_s17 + $0x78] sm:$0xff]  ;;  %v306_v26 = vld [vmem:[%s1551_s17 + $0x70] sm:$0xff]  ;;  %s1134_s17 = sshll.u32 %s1509_s25, 11 }
  0x1e   : > { %v278_v29 = vld [vmem:[%s1617_s15 + $0x10] sm:$0xff]  ;;  %v279_v30 = vld [vmem:[%s1617_s15 + $0x18] sm:$0xff]  ;;  %v276_v31 = vld [vmem:[%s1617_s15] sm:$0xff]  ;;  %s1936_s19 = scalar_lea.hbm %s1991_s6, %s1134_s17 }
  0x1f   : > { %1176 = vmatpush3.bf16.msra.mxu0 %v1277_v10  ;;  %v277_v32 = vld [vmem:[%s1617_s15 + $0x8] sm:$0xff]  ;;  %v280_v42 = vld [vmem:[%s1617_s15 + $0x20] sm:$0xff]  ;;  %v283_v48 = vld [vmem:[%s1617_s15 + $0x38] sm:$0xff] }
  0x20   : > { %1177 = vmatprep.subr.bf16.mxu0 %v1278_v13  ;;  %v281_v41 = vld [vmem:[%s1617_s15 + $0x28] sm:$0xff]  ;;  %v282_v49 = vld [vmem:[%s1617_s15 + $0x30] sm:$0xff]  ;;  %v284_v56 = vld [vmem:[%s1617_s15 + $0x40] sm:$0xff] }
  0x21   : > { %334 = vrot.lane.b32.xlu1 %v297_v8, %s1449_s20  ;;  %332 = vrot.lane.b32.xlu0 %v296_v9, %s1449_s20  ;;  %v285_v55 = vld [vmem:[%s1617_s15 + $0x48] sm:$0xff]  ;;  %v287_v62 = vld [vmem:[%s1617_s15 + $0x58] sm:$0xff] }
  0x22   : > { %v286_v63 = vld [vmem:[%s1617_s15 + $0x50] sm:$0xff]  ;;  %v289_v5 = vld [vmem:[%s1617_s15 + $0x68] sm:$0xff]  ;;  %v288_v6 = vld [vmem:[%s1617_s15 + $0x60] sm:$0xff] }
  0x23   : > { %1178 = vmatpush3.bf16.msra.mxu0 %v1278_v13  ;;  %v290_v13 = vld [vmem:[%s1617_s15 + $0x70] sm:$0xff]  ;;  %v1111_v24 = vld [vmem:[%s1988_s3] ss:$0 sm:$0xff] }
  0x24   : > { %1179 = vmatprep.subr.bf16.mxu0 %v1279_v16 }
  0x25   : > { %338 = vrot.lane.b32.xlu1 %v299_v11, %s1449_s20  ;;  %336 = vrot.lane.b32.xlu0 %v298_v12, %s1449_s20  ;;  %v291_v12 = vld [vmem:[%s1617_s15 + $0x78] sm:$0xff]  ;;  %s259_s15 = sand.u32 1, %s1439_s22  }
  0x26   : > { %s1106_s9 = sshll.u32 %s259_s15, 7  ;;  %s1944_s26 = scalar_lea.sflag [#allocation3], %s259_s15 }
  0x27   : > { %1180 = vmatpush3.bf16.msra.mxu0 %v1279_v16  ;;  %s1900_s14 = scalar_lea.vmem [#allocation2], %s1106_s9 }
  0x28   : > { %1181 = vmatprep.subr.bf16.mxu0 %v1280_v19 }
  0x29   : > { %342 = vrot.lane.b32.xlu1 %v301_v14, %s1449_s20  ;;  %340 = vrot.lane.b32.xlu0 %v300_v15, %s1449_s20 }
  0x2b   : > { %1182 = vmatpush3.bf16.msra.mxu0 %v1280_v19  ;;  %v1284_v19 = vld [vmem:[%s1989_s4 + $0x18] sm:$0xff]  }
  0x2c   : > { %1205 = vmatprep.subr.bf16.mxu1 %v1284_v19 }
  0x2d   : > { %346 = vrot.lane.b32.xlu1 %v303_v17, %s1449_s20  ;;  %344 = vrot.lane.b32.xlu0 %v302_v18, %s1449_s20 }
  0x2e   : > { %1206 = vmatpush3.bf16.msra.mxu1 %v1284_v19 }
  0x2f   : > { %1207 = vmatprep.subr.bf16.mxu1 %v1285_v20 }
  0x31   : > { %350 = vrot.lane.b32.xlu1 %v305_v22, %s1449_s20  ;;  %348 = vrot.lane.b32.xlu0 %v304_v23, %s1449_s20  ;;  %v1287_v22 = vld [vmem:[%s1989_s4 + $0x30] sm:$0xff]   ;;  %v1288_v23 = vld [vmem:[%s1989_s4 + $0x38] sm:$0xff]  }
  0x32   : > { %1208 = vmatpush3.bf16.msra.mxu1 %v1285_v20 }
  0x33   : > { %1209 = vmatprep.subr.bf16.mxu1 %v1286_v21 }
  0x35   : > { %354 = vrot.lane.b32.xlu1 %v307_v25, %s1449_s20  ;;  %352 = vrot.lane.b32.xlu0 %v306_v26, %s1449_s20  ;;  %s1028_s20 = sshll.u32 %s1900_s14, 4  ;;  %s1938_s20 = int_to_ptr.vmem [resolvable:$true] %s1028_s20 }
  0x36   : > { %1210 = vmatpush3.bf16.msra.mxu1 %v1286_v21  ;;  %s1385_s25 = scalar_lea.vmem %s1938_s20, 2048  ;;  %p1392_p0 = scmp.lt.s32.totalorder %s1938_s20, %s1390_s29 }
  0x37   : > { %1211 = vmatprep.subr.bf16.mxu1 %v1287_v22  ;;  %p1386_p11 = scmp.ne.s32.totalorder %s1938_s20, %s1385_s25  ;;  %p1393_p1 = scmp.lt.s32.totalorder %s1391_s10, %s1385_s25 }
  0x39   : > { %p1387_p12 = pnand %p1386_p11, %p1526_p5  ;;  %p1394_p2 = por %p1393_p1, %p1392_p0 }
  0x3a   : > { %1212 = vmatpush3.bf16.msra.mxu1 %v1287_v22 }
  0x3b   : > { %1213 = vmatprep.subr.bf16.mxu1 %v1288_v23  ;;  %p1388_p13 = pneg %p1387_p12 }
  0x3d   : > { %p1395_p3 = pnand %p1394_p2, %p1388_p13 }
  0x3e   : > { %1214 = vmatpush3.bf16.msra.mxu1 %v1288_v23 }
  0x8b   : > { %v329_v27 = vpop.permute.xlu1 %328  ;;  %v325_v28 = vpop.permute.xlu0 %324 }
  0x8c   : > { %v1624_v35 = vsel %vm372_vm0, %v278_v29, %v329_v27  ;;  %v1630_v37 = vsel %vm372_vm0, %v276_v31, %v325_v28 }
  0x8f   : > { %v331_v33 = vpop.permute.xlu1 %330  ;;  %v327_v34 = vpop.permute.xlu0 %326 }
  0x90   : > { %v1627_v36 = vsel %vm372_vm0, %v279_v30, %v331_v33  ;;  %v1633_v38 = vsel %vm372_vm0, %v277_v32, %v327_v34 }
  0x91   : > { %v390_v39 = vpack.c.bf16 %v1627_v36, %v1624_v35  ;;  %v389_v40 = vpack.c.bf16 %v1633_v38, %v1630_v37 }
  0x93   : > { %1183 = vmatprep.mubr.bf16.mxu0 %v389_v40  ;;  %v335_v43 = vpop.permute.xlu1 %334  ;;  %v333_v44 = vpop.permute.xlu0 %332 }
  0x94   : > { %v1642_v45 = vsel %vm372_vm0, %v281_v41, %v335_v43  ;;  %v1645_v46 = vsel %vm372_vm0, %v280_v42, %v333_v44  ;;  %1184 = vmatmul.mubr.bf16.vlgmr.msra.gmra.mrb[0].mxu0 %v390_v39 }
  0x95   : > { %v391_v47 = vpack.c.bf16 %v1642_v45, %v1645_v46 }
  0x97   : > { %v339_v50 = vpop.permute.xlu1 %338  ;;  %v337_v51 = vpop.permute.xlu0 %336  ;;  %1187 = vmatprep.mubr.bf16.mxu0 %v391_v47 }
  0x98   : > { %v1652_v52 = vsel %vm372_vm0, %v283_v48, %v339_v50  ;;  %v1655_v53 = vsel %vm372_vm0, %v282_v49, %v337_v51 }
  0x99   : > { %v392_v54 = vpack.c.bf16 %v1652_v52, %v1655_v53 }
  0x9b   : > { %v343_v57 = vpop.permute.xlu1 %342  ;;  %v341_v58 = vpop.permute.xlu0 %340 }
  0x9c   : > { %v1662_v59 = vsel %vm372_vm0, %v285_v55, %v343_v57  ;;  %v1665_v60 = vsel %vm372_vm0, %v284_v56, %v341_v58  ;;  %1188 = vmatmul.mubr.bf16.gmra.mrb[4].mxu0 %v392_v54 }
  0x9d   : > { %v393_v61 = vpack.c.bf16 %v1662_v59, %v1665_v60 }
  0x9f   : > { %v347_v0 = vpop.permute.xlu1 %346  ;;  %v345_v1 = vpop.permute.xlu0 %344  ;;  %1191 = vmatprep.mubr.bf16.mxu0 %v393_v61 }
  0xa0   : > { %v1672_v2 = vsel %vm372_vm0, %v287_v62, %v347_v0  ;;  %v1675_v3 = vsel %vm372_vm0, %v286_v63, %v345_v1 }
  0xa1   : > { %v394_v4 = vpack.c.bf16 %v1672_v2, %v1675_v3 }
  0xa3   : > { %v351_v7 = vpop.permute.xlu1 %350  ;;  %v349_v8 = vpop.permute.xlu0 %348 }
  0xa4   : > { %v1682_v9 = vsel %vm372_vm0, %v289_v5, %v351_v7  ;;  %v1685_v10 = vsel %vm372_vm0, %v288_v6, %v349_v8  ;;  %1192 = vmatmul.mubr.bf16.gmra.mrb[8].mxu0 %v394_v4 }
  0xa5   : > { %v395_v11 = vpack.c.bf16 %v1682_v9, %v1685_v10 }
  0xa7   : > { %v355_v14 = vpop.permute.xlu1 %354  ;;  %v353_v15 = vpop.permute.xlu0 %352  ;;  %1195 = vmatprep.mubr.bf16.mxu0 %v395_v11 }
  0xa8   : > { %v1692_v16 = vsel %vm372_vm0, %v291_v12, %v355_v14  ;;  %v1695_v17 = vsel %vm372_vm0, %v290_v13, %v353_v15 }
  0xa9   : > { %v396_v18 = vpack.c.bf16 %v1692_v16, %v1695_v17 }
  0xac   : > { %1196 = vmatmul.mubr.bf16.gmra.mrb[12].mxu0 %v396_v18 }
 0x167   : > { %v1185_v25 = vpop.f32.mrb[0].mxu0 }
 0x168   : > { %v511_v26 = vadd.f32 %v1185_v25, %v1111_v24  ;;  %v502_v27 = vpop.f32.mrb[1].mxu0 }
 0x169   : > { %v503_v28 = vadd.f32 %v1111_v24, %v502_v27  ;;  %v1186_v29 = vpop.f32.mrb[2].mxu0 }
 0x16a   : > { %1289 = vtanh.f32 %v511_v26  ;;  %v514_v30 = vadd.f32 %v1186_v29, %v1111_v24  ;;  %v505_v31 = vpop.f32.mrb[3].mxu0 }
 0x16b   : > { %1291 = vtanh.f32 %v503_v28  ;;  %v506_v32 = vadd.f32 %v1111_v24, %v505_v31 }
 0x16c   : > { %1293 = vtanh.f32 %v514_v30 }
 0x16d   : > { %1295 = vtanh.f32 %v506_v32 }
 0x16f   : > { %v1189_v33 = vpop.f32.mrb[4].mxu0 }
 0x170   : > { %v527_v34 = vadd.f32 %v1189_v33, %v1111_v24  ;;  %v518_v39 = vpop.f32.mrb[5].mxu0 }
 0x171   : > { %v519_v40 = vadd.f32 %v1111_v24, %v518_v39  ;;  %v1190_v41 = vpop.f32.mrb[6].mxu0 }
 0x172   : > { %1297 = vtanh.f32 %v527_v34  ;;  %v530_v42 = vadd.f32 %v1190_v41, %v1111_v24  ;;  %v521_v43 = vpop.f32.mrb[7].mxu0 }
 0x173   : > { %1299 = vtanh.f32 %v519_v40  ;;  %v522_v44 = vadd.f32 %v1111_v24, %v521_v43 }
 0x174   : > { %v1290_v47 = vpop.eup %1289  ;;  %1301 = vtanh.f32 %v530_v42 }
 0x175   : > { %v1292_v48 = vpop.eup %1291  ;;  %1303 = vtanh.f32 %v522_v44 }
 0x176   : > { %v1294_v49 = vpop.eup %1293 }
 0x177   : > { %v1296_v50 = vpop.eup %1295  ;;  %v1193_v51 = vpop.f32.mrb[8].mxu0  ;;  %v582_v54 = vpack.c.bf16 %v1294_v49, %v1290_v47 }
 0x178   : > { %v543_v55 = vadd.f32 %v1193_v51, %v1111_v24  ;;  %v534_v56 = vpop.f32.mrb[9].mxu0  ;;  %v581_v57 = vpack.c.bf16 %v1296_v50, %v1292_v48 }
 0x179   : > { %v535_v58 = vadd.f32 %v1111_v24, %v534_v56  ;;  %v1194_v61 = vpop.f32.mrb[10].mxu0 }
 0x17a   : > { %1305 = vtanh.f32 %v543_v55  ;;  %v546_v62 = vadd.f32 %v1194_v61, %v1111_v24  ;;  %v537_v63 = vpop.f32.mrb[11].mxu0  ;;  %1215 = vmatprep.mubr.bf16.mxu1 %v581_v57 }
 0x17b   : > { %1307 = vtanh.f32 %v535_v58  ;;  %v538_v0 = vadd.f32 %v1111_v24, %v537_v63  ;;  %1216 = vmatmul.mubr.bf16.vlgmr.msra.gmra.mrb[0].mxu1 %v582_v54 }
 0x17c   : > { %v1298_v1 = vpop.eup %1297  ;;  %1309 = vtanh.f32 %v546_v62 }
 0x17d   : > { %v1300_v4 = vpop.eup %1299  ;;  %1311 = vtanh.f32 %v538_v0 }
 0x17e   : > { %v1302_v5 = vpop.eup %1301 }
 0x17f   : > { %v1304_v6 = vpop.eup %1303  ;;  %v1197_v7 = vpop.f32.mrb[12].mxu0  ;;  %v584_v8 = vpack.c.bf16 %v1302_v5, %v1298_v1 }
 0x180   : > { %v559_v11 = vadd.f32 %v1197_v7, %v1111_v24  ;;  %v550_v12 = vpop.f32.mrb[13].mxu0  ;;  %v583_v13 = vpack.c.bf16 %v1304_v6, %v1300_v4 }
 0x181   : > { %v551_v14 = vadd.f32 %v1111_v24, %v550_v12  ;;  %v1198_v15 = vpop.f32.mrb[14].mxu0 }
 0x182   : > { %1313 = vtanh.f32 %v559_v11  ;;  %v562_v18 = vadd.f32 %v1198_v15, %v1111_v24  ;;  %v553_v19 = vpop.f32.mrb[15].mxu0  ;;  %1219 = vmatprep.mubr.bf16.mxu1 %v583_v13 }
 0x183   : > { %1315 = vtanh.f32 %v551_v14  ;;  %v554_v20 = vadd.f32 %v1111_v24, %v553_v19  ;;  %1220 = vmatmul.mubr.bf16.gmra.mrb[4].mxu1 %v584_v8  ;;  %v1120_v24 = vld [vmem:[%s1990_s5] ss:$0 sm:$0xff] }
 0x184   : > { %v1306_v21 = vpop.eup %1305  ;;  %1317 = vtanh.f32 %v562_v18 }
 0x185   : > { %v1308_v22 = vpop.eup %1307  ;;  %1319 = vtanh.f32 %v554_v20 }
 0x186   : > { %v1310_v23 = vpop.eup %1309 }
 0x187   : > { %v1312_v25 = vpop.eup %1311  ;;  %v586_v26 = vpack.c.bf16 %v1310_v23, %v1306_v21 }
 0x188   : > { %v585_v27 = vpack.c.bf16 %v1312_v25, %v1308_v22 }
 0x18a   : > { %1223 = vmatprep.mubr.bf16.mxu1 %v585_v27 }
 0x18b   : > { %1224 = vmatmul.mubr.bf16.gmra.mrb[8].mxu1 %v586_v26 }
 0x18c   : > { %v1314_v28 = vpop.eup %1313 }
 0x18d   : > { %v1316_v29 = vpop.eup %1315 }
 0x18e   : > { %v1318_v30 = vpop.eup %1317 }
 0x18f   : > { %v1320_v31 = vpop.eup %1319  ;;  %v588_v32 = vpack.c.bf16 %v1318_v30, %v1314_v28 }
 0x190   : > { %v587_v33 = vpack.c.bf16 %v1320_v31, %v1316_v29 }
 0x192   : > { %1227 = vmatprep.mubr.bf16.mxu1 %v587_v33 }
 0x193   : > { %1228 = vmatmul.mubr.bf16.gmra.mrb[12].mxu1 %v588_v32 }
 0x24e   : > { %v1217_v34 = vpop.f32.mrb[0].mxu1 }
 0x24f   : > { %v1720_v39 = vadd.f32 %v1217_v34, %v1120_v24  ;;  %v694_v40 = vpop.f32.mrb[1].mxu1 }
 0x250   : > { %v1218_v41 = vpop.f32.mrb[2].mxu1  ;;  %v1722_v42 = vadd.f32 %v1120_v24, %v694_v40 }
 0x251   : > { %v697_v43 = vpop.f32.mrb[3].mxu1  ;;  %v764_v44 = vsel %vm757_vm1, %v1720_v39, -inf  ;;  %v1730_v49 = vadd.f32 %v1218_v41, %v1120_v24 }
 0x252   : > { %v1726_v47 = vadd.f32 %v1120_v24, %v697_v43  ;;  %765 = vmax.xlane.f32.xlu0 %v764_v44  ;;  %v758_v50 = vsel %vm757_vm1, %v1722_v42, -inf }
 0x253   : > { %v767_v63 = vsel %vm757_vm1, %v1730_v49, -inf }
 0x254   : > { %v761_v48 = vsel %vm757_vm1, %v1726_v47, -inf }
 0x255   : > { %762 = vmax.xlane.f32.xlu1 %v761_v48 }
 0x256   : > { %v1221_v51 = vpop.f32.mrb[4].mxu1  ;;  %759 = vmax.xlane.f32.xlu0 %v758_v50 }
 0x257   : > { %v1734_v54 = vadd.f32 %v1221_v51, %v1120_v24  ;;  %v710_v55 = vpop.f32.mrb[5].mxu1 }
 0x258   : > { %v1222_v56 = vpop.f32.mrb[6].mxu1  ;;  %v1736_v57 = vadd.f32 %v1120_v24, %v710_v55 }
 0x259   : > { %v1738_v58 = vadd.f32 %v1222_v56, %v1120_v24  ;;  %v713_v61 = vpop.f32.mrb[7].mxu1  ;;  %v776_v62 = vsel %vm757_vm1, %v1734_v54, -inf }
 0x25a   : > { %777 = vmax.xlane.f32.xlu1 %v776_v62  ;;  %768 = vmax.xlane.f32.xlu0 %v767_v63  ;;  %v1744_v0 = vadd.f32 %v1120_v24, %v713_v61  ;;  %v770_v1 = vsel %vm757_vm1, %v1736_v57, -inf }
 0x25b   : > { %v779_v4 = vsel %vm757_vm1, %v1738_v58, -inf }
 0x25c   : > { %v773_v15 = vsel %vm757_vm1, %v1744_v0, -inf }
 0x25e   : > { %v1225_v5 = vpop.f32.mrb[8].mxu1  ;;  %771 = vmax.xlane.f32.xlu1 %v770_v1  ;;  %780 = vmax.xlane.f32.xlu0 %v779_v4 }
 0x25f   : > { %v1750_v6 = vadd.f32 %v1225_v5, %v1120_v24  ;;  %v726_v7 = vpop.f32.mrb[9].mxu1 }
 0x260   : > { %v1226_v8 = vpop.f32.mrb[10].mxu1  ;;  %v1752_v11 = vadd.f32 %v1120_v24, %v726_v7 }
 0x261   : > { %v1754_v12 = vadd.f32 %v1226_v8, %v1120_v24  ;;  %v729_v13 = vpop.f32.mrb[11].mxu1  ;;  %v788_v14 = vsel %vm757_vm1, %v1750_v6, -inf }
 0x262   : > { %789 = vmax.xlane.f32.xlu1 %v788_v14  ;;  %774 = vmax.xlane.f32.xlu0 %v773_v15  ;;  %v1760_v18 = vadd.f32 %v1120_v24, %v729_v13  ;;  %v782_v19 = vsel %vm757_vm1, %v1752_v11, -inf }
 0x263   : > { %v791_v20 = vsel %vm757_vm1, %v1754_v12, -inf }
 0x264   : > { %v785_v27 = vsel %vm757_vm1, %v1760_v18, -inf }
 0x266   : > { %v1229_v21 = vpop.f32.mrb[12].mxu1  ;;  %783 = vmax.xlane.f32.xlu1 %v782_v19  ;;  %792 = vmax.xlane.f32.xlu0 %v791_v20 }
 0x267   : > { %v742_v22 = vpop.f32.mrb[13].mxu1  ;;  %v1770_v28 = vadd.f32 %v1229_v21, %v1120_v24 }
 0x268   : > { %v1766_v23 = vadd.f32 %v1120_v24, %v742_v22  ;;  %v1230_v25 = vpop.f32.mrb[14].mxu1 }
 0x269   : > { %v745_v26 = vpop.f32.mrb[15].mxu1  ;;  %v1778_v32 = vadd.f32 %v1230_v25, %v1120_v24  ;;  %v800_v33 = vsel %vm757_vm1, %v1770_v28, -inf }
 0x26a   : > { %v1772_v29 = vadd.f32 %v1120_v24, %v745_v26  ;;  %786 = vmax.xlane.f32.xlu0 %v785_v27  ;;  %v794_v30 = vsel %vm757_vm1, %v1766_v23, -inf }
 0x26b   : > { %795 = vmax.xlane.f32.xlu1 %v794_v30  ;;  %v803_v34 = vsel %vm757_vm1, %v1778_v32, -inf }
 0x26c   : > { %v797_v31 = vsel %vm757_vm1, %v1772_v29, -inf }
 0x26e   : > { %798 = vmax.xlane.f32.xlu0 %v797_v31 }
 0x26f   : > { %801 = vmax.xlane.f32.xlu1 %v800_v33 }
 0x272   : > { %804 = vmax.xlane.f32.xlu0 %v803_v34 }
 0x2df   : > { %v766_v40 = vpop.xlane.xlu0 %765 }
 0x2e0   : > { %v808_v41 = vsub.f32 %v1720_v39, %v766_v40 }
 0x2e2   : > { %v826_v43 = vmul.f32 1.442695, %v808_v41  ;;  %v763_v44 = vpop.xlane.xlu1 %762 }
 0x2e3   : > { %v760_v48 = vpop.xlane.xlu0 %759  ;;  %v807_v51 = vsub.f32 %v1726_v47, %v763_v44 }
 0x2e4   : > { %1321 = vpow2.f32 %v826_v43  ;;  %v806_v50 = vsub.f32 %v1722_v42, %v760_v48 }
 0x2e5   : > { %v824_v4 = vmul.f32 1.442695, %v807_v51 }
 0x2e6   : > { %v822_v24 = vmul.f32 1.442695, %v806_v50 }
 0x2e7   : > { %v778_v55 = vpop.xlane.xlu1 %777  ;;  %v769_v56 = vpop.xlane.xlu0 %768 }
 0x2e8   : > { %1323 = vpow2.f32 %v822_v24  ;;  %v812_v61 = vsub.f32 %v1734_v54, %v778_v55  ;;  %v809_v62 = vsub.f32 %v1730_v49, %v769_v56 }
 0x2ea   : > { %v834_v63 = vmul.f32 1.442695, %v812_v61  ;;  %v828_v1 = vmul.f32 1.442695, %v809_v62 }
 0x2eb   : > { %v772_v39 = vpop.xlane.xlu1 %771  ;;  %v781_v5 = vpop.xlane.xlu0 %780 }
 0x2ec   : > { %1325 = vpow2.f32 %v834_v63  ;;  %v810_v7 = vsub.f32 %v1736_v57, %v772_v39  ;;  %v813_v42 = vsub.f32 %v1738_v58, %v781_v5 }
 0x2ed   : > { %1327 = vpow2.f32 %v828_v1 }
 0x2ee   : > { %v1791_v8 = vpop.eup %1321  ;;  %v830_v47 = vmul.f32 1.442695, %v810_v7  ;;  %1329 = vpow2.f32 %v824_v4  ;;  %v836_v13 = vmul.f32 1.442695, %v813_v42 }
 0x2ef   : > { %v790_v14 = vpop.xlane.xlu1 %789  ;;  %v775_v54 = vpop.xlane.xlu0 %774  ;;  %v860_v49 = vsel %vm757_vm1, %v1791_v8, 0.0 }
 0x2f0   : > { %1331 = vpow2.f32 %v830_v47  ;;  %v816_v15 = vsub.f32 %v1750_v6, %v790_v14  ;;  %v811_v19 = vsub.f32 %v1744_v0, %v775_v54  ;;  %861 = vadd.xlane.f32.xlu1 %v860_v49 }
 0x2f1   : > { %1333 = vpow2.f32 %v836_v13 }
 0x2f2   : > { %v1797_v57 = vpop.eup %1323  ;;  %v842_v58 = vmul.f32 1.442695, %v816_v15  ;;  %v832_v20 = vmul.f32 1.442695, %v811_v19 }
 0x2f3   : > { %v784_v21 = vpop.xlane.xlu1 %783  ;;  %v793_v22 = vpop.xlane.xlu0 %792  ;;  %v854_v25 = vsel %vm757_vm1, %v1797_v57, 0.0 }
 0x2f4   : > { %1335 = vpow2.f32 %v842_v58  ;;  %v814_v26 = vsub.f32 %v1752_v11, %v784_v21  ;;  %v817_v27 = vsub.f32 %v1754_v12, %v793_v22  ;;  %855 = vadd.xlane.f32.xlu1 %v854_v25 }
 0x2f5   : > { %1337 = vpow2.f32 %v832_v20 }
 0x2f6   : > { %v1803_v6 = vpop.eup %1325  ;;  %v838_v0 = vmul.f32 1.442695, %v814_v26  ;;  %v844_v31 = vmul.f32 1.442695, %v817_v27 }
 0x2f7   : > { %v1805_v30 = vpop.eup %1327  ;;  %v787_v33 = vpop.xlane.xlu0 %786  ;;  %v872_v34 = vsel %vm757_vm1, %v1803_v6, 0.0 }
 0x2f8   : > { %1339 = vpow2.f32 %v838_v0  ;;  %v815_v40 = vsub.f32 %v1760_v18, %v787_v33  ;;  %v796_v41 = vpop.xlane.xlu1 %795  ;;  %873 = vadd.xlane.f32.xlu1 %v872_v34  ;;  %v863_v11 = vsel %vm757_vm1, %v1805_v30, 0.0  ;;  %v1812_v12 = vpop.eup %1329 }
 0x2f9   : > { %v818_v43 = vsub.f32 %v1766_v23, %v796_v41  ;;  %864 = vadd.xlane.f32.xlu0 %v863_v11  ;;  %1341 = vpow2.f32 %v844_v31  ;;  %v857_v56 = vsel %vm757_vm1, %v1812_v12, 0.0 }
 0x2fa   : > { %v1815_v44 = vpop.eup %1331  ;;  %v840_v48 = vmul.f32 1.442695, %v815_v40 }
 0x2fb   : > { %v846_v50 = vmul.f32 1.442695, %v818_v43  ;;  %v799_v24 = vpop.xlane.xlu0 %798  ;;  %v866_v51 = vsel %vm757_vm1, %v1815_v44, 0.0  ;;  %v1822_v61 = vpop.eup %1333 }
 0x2fc   : > { %v819_v18 = vsub.f32 %v1772_v29, %v799_v24  ;;  %v802_v55 = vpop.xlane.xlu1 %801  ;;  %867 = vadd.xlane.f32.xlu1 %v866_v51  ;;  %v875_v5 = vsel %vm757_vm1, %v1822_v61, 0.0 }
 0x2fd   : > { %1343 = vpow2.f32 %v846_v50  ;;  %v820_v23 = vsub.f32 %v1770_v28, %v802_v55  ;;  %858 = vadd.xlane.f32.xlu0 %v857_v56 }
 0x2fe   : > { %v1825_v62 = vpop.eup %1335  ;;  %1345 = vpow2.f32 %v840_v48  ;;  %v848_v63 = vmul.f32 1.442695, %v819_v18 }
 0x2ff   : > { %v850_v1 = vmul.f32 1.442695, %v820_v23  ;;  %v805_v4 = vpop.xlane.xlu0 %804  ;;  %v884_v29 = vsel %vm757_vm1, %v1825_v62, 0.0  ;;  %v1832_v7 = vpop.eup %1337 }
 0x300   : > { %v821_v39 = vsub.f32 %v1778_v32, %v805_v4  ;;  %885 = vadd.xlane.f32.xlu1 %v884_v29  ;;  %v869_v13 = vsel %vm757_vm1, %v1832_v7, 0.0 }
 0x301   : > { %1347 = vpow2.f32 %v850_v1  ;;  %876 = vadd.xlane.f32.xlu0 %v875_v5 }
 0x302   : > { %v1834_v28 = vpop.eup %1339  ;;  %1349 = vpow2.f32 %v848_v63  ;;  %v852_v42 = vmul.f32 1.442695, %v821_v39 }
 0x303   : > { %v878_v47 = vsel %vm757_vm1, %v1834_v28, 0.0  ;;  %v1840_v32 = vpop.eup %1341 }
 0x304   : > { %879 = vadd.xlane.f32.xlu1 %v878_v47  ;;  %1351 = vpow2.f32 %v852_v42  ;;  %v887_v54 = vsel %vm757_vm1, %v1840_v32, 0.0 }
 0x305   : > { %870 = vadd.xlane.f32.xlu0 %v869_v13 }
 0x307   : > { %v1842_v14 = vpop.eup %1343 }
 0x308   : > { %v890_v49 = vsel %vm757_vm1, %v1842_v14, 0.0  ;;  %v1848_v15 = vpop.eup %1345 }
 0x309   : > { %888 = vadd.xlane.f32.xlu0 %v887_v54  ;;  %891 = vadd.xlane.f32.xlu1 %v890_v49  ;;  %v881_v58 = vsel %vm757_vm1, %v1848_v15, 0.0 }
 0x30b   : > { %v1850_v19 = vpop.eup %1347 }
 0x30c   : > { %v896_v20 = vsel %vm757_vm1, %v1850_v19, 0.0  ;;  %v1856_v21 = vpop.eup %1349 }
 0x30d   : > { %882 = vadd.xlane.f32.xlu0 %v881_v58  ;;  %897 = vadd.xlane.f32.xlu1 %v896_v20  ;;  %v893_v22 = vsel %vm757_vm1, %v1856_v21, 0.0 }
 0x30e   : > { %v1860_v25 = vpop.eup %1351 }
 0x30f   : > { %v899_v26 = vsel %vm757_vm1, %v1860_v25, 0.0 }
 0x311   : > { %894 = vadd.xlane.f32.xlu0 %v893_v22 }
 0x315   : > { %900 = vadd.xlane.f32.xlu0 %v899_v26 }
 0x37d   : > { %v862_v27 = vpop.xlane.xlu1 %861 }
 0x37e   : > { %1353 = vrcp.f32 %v862_v27 }
 0x381   : > { %v856_v0 = vpop.xlane.xlu1 %855 }
 0x382   : > { %1355 = vrcp.f32 %v856_v0 }
 0x385   : > { %v874_v31 = vpop.xlane.xlu1 %873 }
 0x386   : > { %1357 = vrcp.f32 %v874_v31  ;;  %v865_v33 = vpop.xlane.xlu0 %864 }
 0x387   : > { %1359 = vrcp.f32 %v865_v33 }
 0x388   : > { %v1354_v34 = vpop.eup %1353 }
 0x389   : > { %v868_v40 = vpop.xlane.xlu1 %867  ;;  %v907_v41 = vmul.f32 %v1354_v34, %v1791_v8 }
 0x38a   : > { %1361 = vrcp.f32 %v868_v40  ;;  %v859_v11 = vpop.xlane.xlu0 %858 }
 0x38b   : > { %1363 = vrcp.f32 %v859_v11  ;;  %v940_v43 = vsel %vm757_vm1, %v907_v41, 0.0 }
 0x38c   : > { %v1356_v48 = vpop.eup %1355  ;;  %941 = vadd.xlane.f32.xlu1 %v940_v43 }
 0x38d   : > { %v886_v50 = vpop.xlane.xlu1 %885  ;;  %v903_v24 = vmul.f32 %v1356_v48, %v1797_v57 }
 0x38e   : > { %1365 = vrcp.f32 %v886_v50  ;;  %v877_v51 = vpop.xlane.xlu0 %876 }
 0x38f   : > { %1367 = vrcp.f32 %v877_v51  ;;  %v934_v18 = vsel %vm757_vm1, %v903_v24, 0.0 }
 0x390   : > { %v1358_v55 = vpop.eup %1357  ;;  %935 = vadd.xlane.f32.xlu1 %v934_v18 }
 0x391   : > { %v1360_v56 = vpop.eup %1359  ;;  %v880_v23 = vpop.xlane.xlu1 %879  ;;  %v915_v8 = vmul.f32 %v1358_v55, %v1803_v6 }
 0x392   : > { %1369 = vrcp.f32 %v880_v23  ;;  %v871_v63 = vpop.xlane.xlu0 %870  ;;  %v909_v1 = vmul.f32 %v1360_v56, %v1805_v30 }
 0x393   : > { %1371 = vrcp.f32 %v871_v63  ;;  %v952_v4 = vsel %vm757_vm1, %v915_v8, 0.0 }
 0x394   : > { %v1362_v29 = vpop.eup %1361  ;;  %953 = vadd.xlane.f32.xlu1 %v952_v4  ;;  %v943_v57 = vsel %vm757_vm1, %v909_v1, 0.0 }
 0x395   : > { %v1364_v39 = vpop.eup %1363  ;;  %944 = vadd.xlane.f32.xlu0 %v943_v57  ;;  %v911_v5 = vmul.f32 %v1362_v29, %v1815_v44 }
 0x396   : > { %v889_v42 = vpop.xlane.xlu0 %888  ;;  %v892_v47 = vpop.xlane.xlu1 %891  ;;  %v905_v13 = vmul.f32 %v1364_v39, %v1812_v12 }
 0x397   : > { %1373 = vrcp.f32 %v889_v42  ;;  %v946_v6 = vsel %vm757_vm1, %v911_v5, 0.0 }
 0x398   : > { %v1366_v54 = vpop.eup %1365  ;;  %1375 = vrcp.f32 %v892_v47  ;;  %947 = vadd.xlane.f32.xlu1 %v946_v6  ;;  %v937_v30 = vsel %vm757_vm1, %v905_v13, 0.0 }
 0x399   : > { %v1368_v49 = vpop.eup %1367  ;;  %938 = vadd.xlane.f32.xlu0 %v937_v30  ;;  %v923_v58 = vmul.f32 %v1366_v54, %v1825_v62 }
 0x39a   : > { %v883_v20 = vpop.xlane.xlu0 %882  ;;  %v898_v22 = vpop.xlane.xlu1 %897  ;;  %v917_v44 = vmul.f32 %v1368_v49, %v1822_v61 }
 0x39b   : > { %1377 = vrcp.f32 %v883_v20  ;;  %v964_v26 = vsel %vm757_vm1, %v923_v58, 0.0 }
 0x39c   : > { %v1370_v12 = vpop.eup %1369  ;;  %1379 = vrcp.f32 %v898_v22  ;;  %965 = vadd.xlane.f32.xlu1 %v964_v26  ;;  %v955_v27 = vsel %vm757_vm1, %v917_v44, 0.0 }
 0x39d   : > { %v1372_v0 = vpop.eup %1371  ;;  %956 = vadd.xlane.f32.xlu0 %v955_v27  ;;  %v919_v31 = vmul.f32 %v1370_v12, %v1834_v28 }
 0x39e   : > { %v895_v33 = vpop.xlane.xlu0 %894  ;;  %v913_v34 = vmul.f32 %v1372_v0, %v1832_v7 }
 0x39f   : > { %1381 = vrcp.f32 %v895_v33  ;;  %v958_v62 = vsel %vm757_vm1, %v919_v31, 0.0 }
 0x3a0   : > { %959 = vadd.xlane.f32.xlu1 %v958_v62  ;;  %v949_v61 = vsel %vm757_vm1, %v913_v34, 0.0 }
 0x3a1   : > { %v1374_v40 = vpop.eup %1373  ;;  %950 = vadd.xlane.f32.xlu0 %v949_v61 }
 0x3a2   : > { %v1376_v41 = vpop.eup %1375  ;;  %v901_v11 = vpop.xlane.xlu0 %900  ;;  %v925_v43 = vmul.f32 %v1374_v40, %v1840_v32 }
 0x3a3   : > { %1383 = vrcp.f32 %v901_v11  ;;  %v927_v48 = vmul.f32 %v1376_v41, %v1842_v14 }
 0x3a4   : > { %v967_v28 = vsel %vm757_vm1, %v925_v43, 0.0 }
 0x3a5   : > { %v1378_v50 = vpop.eup %1377  ;;  %968 = vadd.xlane.f32.xlu0 %v967_v28  ;;  %v970_v7 = vsel %vm757_vm1, %v927_v48, 0.0 }
 0x3a6   : > { %v1380_v24 = vpop.eup %1379  ;;  %971 = vadd.xlane.f32.xlu1 %v970_v7  ;;  %v921_v51 = vmul.f32 %v1378_v50, %v1848_v15 }
 0x3a7   : > { %v931_v18 = vmul.f32 %v1380_v24, %v1850_v19 }
 0x3a8   : > { %v961_v55 = vsel %vm757_vm1, %v921_v51, 0.0 }
 0x3a9   : > { %v1382_v32 = vpop.eup %1381  ;;  %962 = vadd.xlane.f32.xlu0 %v961_v55  ;;  %v976_v14 = vsel %vm757_vm1, %v931_v18, 0.0 }
 0x3aa   : > { %977 = vadd.xlane.f32.xlu1 %v976_v14  ;;  %v929_v56 = vmul.f32 %v1382_v32, %v1856_v21 }
 0x3ac   : > { %v973_v23 = vsel %vm757_vm1, %v929_v56, 0.0 }
 0x3ad   : > { %v1384_v8 = vpop.eup %1383  ;;  %974 = vadd.xlane.f32.xlu0 %v973_v23 }
 0x3ae   : > { %v933_v63 = vmul.f32 %v1384_v8, %v1860_v25 }
 0x3b0   : > { %v979_v1 = vsel %vm757_vm1, %v933_v63, 0.0 }
 0x3b1   : > { %980 = vadd.xlane.f32.xlu0 %v979_v1 }
 0x419   : > { %v942_v15 = vpop.xlane.xlu1 %941 }
 0x41a   : > { %v984_v19 = vmul.f32 %v942_v15, %v1624_v35 }
 0x41c   : > { %1000 = vst [vmem:[%s1900_s14 + $0x10] sm:$0xff] %v984_v19 }
 0x41d   : > { %v936_v21 = vpop.xlane.xlu1 %935 }
 0x41e   : > { %v982_v25 = vmul.f32 %v936_v21, %v1630_v37 }
 0x420   : > { %998 = vst [vmem:[%s1900_s14] sm:$0xff] %v982_v25 }
 0x421   : > { %v954_v4 = vpop.xlane.xlu1 %953 }
 0x422   : > { %v988_v29 = vmul.f32 %v954_v4, %v1655_v53  ;;  %v945_v57 = vpop.xlane.xlu0 %944 }
 0x423   : > { %v985_v35 = vmul.f32 %v945_v57, %v1627_v36 }
 0x424   : > { %1004 = vst [vmem:[%s1900_s14 + $0x30] sm:$0xff] %v988_v29 }
 0x425   : > { %1001 = vst [vmem:[%s1900_s14 + $0x18] sm:$0xff] %v985_v35  ;;  %v948_v39 = vpop.xlane.xlu1 %947 }
 0x426   : > { %v986_v5 = vmul.f32 %v948_v39, %v1645_v46  ;;  %v939_v42 = vpop.xlane.xlu0 %938 }
 0x427   : > { %v983_v47 = vmul.f32 %v939_v42, %v1633_v38 }
 0x428   : > { %1002 = vst [vmem:[%s1900_s14 + $0x20] sm:$0xff] %v986_v5 }
 0x429   : > { %999 = vst [vmem:[%s1900_s14 + $0x8] sm:$0xff] %v983_v47  ;;  %v966_v37 = vpop.xlane.xlu1 %965 }
 0x42a   : > { %v992_v53 = vmul.f32 %v966_v37, %v1675_v3  ;;  %v957_v13 = vpop.xlane.xlu0 %956 }
 0x42b   : > { %v989_v36 = vmul.f32 %v957_v13, %v1652_v52 }
 0x42c   : > { %1008 = vst [vmem:[%s1900_s14 + $0x50] sm:$0xff] %v992_v53 }
 0x42d   : > { %1005 = vst [vmem:[%s1900_s14 + $0x38] sm:$0xff] %v989_v36  ;;  %v960_v6 = vpop.xlane.xlu1 %959 }
 0x42e   : > { %v990_v46 = vmul.f32 %v960_v6, %v1665_v60  ;;  %v951_v54 = vpop.xlane.xlu0 %950 }
 0x42f   : > { %v987_v38 = vmul.f32 %v951_v54, %v1642_v45 }
 0x430   : > { %1006 = vst [vmem:[%s1900_s14 + $0x40] sm:$0xff] %v990_v46 }
 0x431   : > { %1003 = vst [vmem:[%s1900_s14 + $0x28] sm:$0xff] %v987_v38 }
 0x432   : > { %v969_v30 = vpop.xlane.xlu0 %968 }
 0x433   : > { %v993_v3 = vmul.f32 %v969_v30, %v1672_v2  ;;  %v972_v49 = vpop.xlane.xlu1 %971 }
 0x434   : > { %v994_v52 = vmul.f32 %v972_v49, %v1685_v10 }
 0x435   : > { %1009 = vst [vmem:[%s1900_s14 + $0x58] sm:$0xff] %v993_v3 }
 0x436   : > { %1010 = vst [vmem:[%s1900_s14 + $0x60] sm:$0xff] %v994_v52  ;;  %v963_v58 = vpop.xlane.xlu0 %962 }
 0x437   : > { %v991_v60 = vmul.f32 %v963_v58, %v1662_v59  ;;  %v978_v20 = vpop.xlane.xlu1 %977 }
 0x438   : > { %v996_v45 = vmul.f32 %v978_v20, %v1695_v17 }
 0x439   : > { %1007 = vst [vmem:[%s1900_s14 + $0x48] sm:$0xff] %v991_v60 }
 0x43a   : > { %1012 = vst [vmem:[%s1900_s14 + $0x70] sm:$0xff] %v996_v45  ;;  %v975_v22 = vpop.xlane.xlu0 %974 }
 0x43b   : > { %v995_v44 = vmul.f32 %v975_v22, %v1682_v9 }
 0x43d   : > { %1011 = vst [vmem:[%s1900_s14 + $0x68] sm:$0xff] %v995_v44 }
 0x43e   : > { %v981_v2 = vpop.xlane.xlu0 %980 }
 0x43f   : > { %v997_v59 = vmul.f32 %v981_v2, %v1692_v16 }
 0x441   : > { %1013 = vst [vmem:[%s1900_s14 + $0x78] sm:$0xff] %v997_v59 }
 0x442   : > { %1398 = shalt.err (!%p1395_p3)
}
 0x443   : > { %s1399_s11 = scalar_lea.hbm %s1936_s19, 2048  ;;  %s1403_s15 = scalar_lea.hbm %s1991_s6, 4096 }
 0x444   : > { %p1400_p4 = scmp.ne.s32.totalorder %s1936_s19, %s1399_s11  ;;  %p1404_p9 = scmp.lt.u32.totalorder %s1936_s19, %s1991_s6 }
 0x445   : > { %p1405_p10 = scmp.lt.u32.totalorder %s1403_s15, %s1399_s11  ;;  %p1407_p12 = scmp.lt.u32.totalorder %s1399_s11, %s1936_s19 }
 0x446   : > { %p1401_p7 = pnand %p1400_p4, %p1526_p5 }
 0x447   : > { %p1406_p11 = por %p1405_p10, %p1404_p9 }
 0x448   : > { %p1402_p8 = pneg %p1401_p7 }
 0x449   : > { %p1408_p13 = por %p1407_p12, %p1406_p11 }
 0x44b   : > { %p1409_p0 = pnand %p1408_p13, %p1402_p8 }
 0x44d   : > { %1412 = shalt.err (!%p1409_p0)
}
 0x44e   : > { %s1451_s17 = smov 128   ;;  %s1452_s16 = smov 8  }
 0x44f   : > { %1231 = dma.vmem_to_hbm [thread:$0]  (%p1526_p5), %s1938_s20, 2048, %s1936_s19, %s1944_s26, %s1451_s17, %s1451_s17, %s1452_s16  }
 0x450 PF: > { %p1237_p1 = scmp.ge.s32.totalorder %s1447_s24, 2  ;;  %s1043_s18 = sand.u32 1, %s1435_s21  }
 0x451   : > { %s1044_s25 = scalar_lea.sflag [#allocation3], %s1043_s18 }
 0x452   : > { %p1234_p2 = pnand %p1237_p1, %p1530_p6 }
 0x454   : > { %1430 = dma.done.wait (!%p1234_p2), %s1044_s25, 2048  }
 0x455   : > { %1432 = vsyncadd (!%p1234_p2), %s1044_s25, 4294965248  ;;  %p16_p3 = scmp.ge.s32.totalorder %s1513_s27, 4   ;;  %s1994_s21 = smov %s1439_s22 }
 0x456   : > { %s1995_s22 = smov %s1443_s23  ;;  %s1996_s23 = smov %s1524_s30 }
 0x457   : > { %s1997_s24 = smov %s1513_s27  ;;  %18 = sbr.rel (!%p16_p3) target bundleno = 3 (0x3), region = 82 }
 0x45e   :  { %1049 = vsyncpa [#allocation3], 1 }
 0x45f   :  { %1051 = vsyncpa [#allocation3 + $0x1], 1 }

</bundles_post_ra>
